<compile_context>
chip_gen: v6e
topology: v6e:2x2x1
jax: 0.10.0
libtpu: 0.0.40
codegen_flags: <defaults>
</compile_context>

<pallas_src>
import jax
import jax.numpy as jnp
from jax.experimental import pallas as pl
from jax.experimental.pallas import tpu as pltpu

_LANE = 128
_SUBLANE = 8
_VMEM_BUDGET = 40 << 20          # safe against v7x's 64 MiB physical VMEM
_MAX_TM = 512                    # amortizes ~0.35us per-grid-step overhead on v5e/v6e


def _round_up(x, m):
    return (x + m - 1) // m * m


def _make_fused_mlp_kernel(num_layers):
    """Kernel args: (x_ref, w0_ref, b0_ref, ..., w{L-1}_ref, b{L-1}_ref, o_ref)."""

    def kernel(*refs):
        x_ref = refs[0]
        o_ref = refs[-1]
        h = x_ref[...]                               # (tm, F0), f32
        for i in range(num_layers):                  # unrolled at trace time
            w = refs[1 + 2 * i][...]                 # (Fin_i, Fout_i)
            b = refs[2 + 2 * i][...]                 # (1,     Fout_i)
            # True-f32 MXU matmul (HIGHEST => multi-pass f32) to match
            # torch.nn.Linear numerics; activations never leave VMEM/vregs.
            h = jnp.dot(h, w,
                        preferred_element_type=jnp.float32,
                        precision=jax.lax.Precision.HIGHEST) + b
        o_ref[...] = h.astype(o_ref.dtype)

    return kernel


def fused_mlp(x, padded_params, out_features):
    """Run the whole MLP in a single pallas_call.

    x:             (M, F0) f32 — NOT padded by the wrapper.
    padded_params: list of (w (Fin_i, Fout_i), b (1, Fout_i)); hidden dims are
                   zero-padded to multiples of 128 at build time, the first
                   layer keeps the true input width and the last layer keeps
                   the true output width.
    """
    m, f0 = x.shape
    num_layers = len(padded_params)
    flast = padded_params[-1][0].shape[1]            # last layer is unpadded
    assert flast == out_features

    param_bytes = sum(w.size + b.size for w, b in padded_params) * 4
    max_w = max([f0, flast] + [w.shape[1] for w, _ in padded_params])

    def est_bytes(tm):
        tiles = 2 * tm * (f0 + flast) * 4        # double-buffered in/out tiles
        inter = 2 * tm * max_w * 4               # intermediate h + MXU results
        return tiles + inter + 2 * param_bytes + (4 << 20)  # 2x params = worst case

    # --- batch tiling -------------------------------------------------------
    if m < 2 * _SUBLANE:
        tm = m                                   # single full-extent tile
    else:
        # >=2 tiles so ("parallel",) can use both v7x TensorCores; tiles up to
        # 512 rows amortize per-grid-step DMA overhead on v5e/v6e.
        tm = min(_MAX_TM, _round_up(-(-m // 2), _SUBLANE))
        while tm > _SUBLANE and est_bytes(tm) > _VMEM_BUDGET:
            tm = _round_up(tm // 2, _SUBLANE)
    # TODO(synk): if est_bytes(8) still exceeds the budget (very wide layers on
    # v7x), switch to streaming weights over an extra grid axis.

    grid = (pl.cdiv(m, tm),)                     # ragged last tile: OOB writes discarded
    vmem_limit = int(min(max(est_bytes(tm), 16 << 20), 64 << 20))

    flat_inputs = [x]
    for w_p, b_p in padded_params:
        flat_inputs += [w_p, b_p]

    def build_specs(single_buffer_params):
        in_specs = [pl.BlockSpec((tm, f0), lambda i: (i, 0))]
        for w_p, b_p in padded_params:
            if single_buffer_params:
                # Constant index_map => grid-invariant operand; one resident
                # VMEM copy is enough (default double-buffering wastes VMEM,
                # which matters most on v7x's 64 MiB).
                in_specs.append(pl.BlockSpec(w_p.shape, lambda i: (0, 0),
                                             pipeline_mode=pl.Buffered(1)))
                in_specs.append(pl.BlockSpec(b_p.shape, lambda i: (0, 0),
                                             pipeline_mode=pl.Buffered(1)))
            else:
                in_specs.append(pl.BlockSpec(w_p.shape, lambda i: (0, 0)))
                in_specs.append(pl.BlockSpec(b_p.shape, lambda i: (0, 0)))
        out_specs = pl.BlockSpec((tm, flast), lambda i: (i, 0))
        return in_specs, out_specs

    def run(single_buffer_params):
        in_specs, out_specs = build_specs(single_buffer_params)
        return pl.pallas_call(
            _make_fused_mlp_kernel(num_layers),
            out_shape=jax.ShapeDtypeStruct((m, flast), x.dtype),
            grid_spec=pltpu.PrefetchScalarGridSpec(
                num_scalar_prefetch=0,
                grid=grid,
                in_specs=in_specs,
                out_specs=out_specs,
            ),
            compiler_params=pltpu.CompilerParams(
                dimension_semantics=("parallel",),   # shard batch tiles across TCs
                vmem_limit_bytes=vmem_limit,
            ),
        )(*flat_inputs)

    try:
        return jax.block_until_ready(run(True))
    except Exception:
        # Fallback for JAX versions that reject Buffered(1) on pallas_call
        # operands: keep the (small) default double-buffering of params.
        return run(False)


class MLPPallas:
    """Mirrors the lazily-built torch MLP: Linear(in, s0), Linear(s0, s1), ..."""

    def __init__(self, output_sizes):
        self.output_sizes = list(output_sizes)
        self.params = None          # raw (w_t (Fin, Fout), b (Fout,)) — torch layout, pre-transposed
        self.padded_params = None   # build-time lane-padded copies fed to the kernel

    def _build(self, in_features, key):
        raw, padded = [], []
        num_layers = len(self.output_sizes)
        fin = in_features
        for i, fout in enumerate(self.output_sizes):
            key, kw, kb = jax.random.split(key, 3)
            # Deterministic init, same scale as torch's default Linear init.
            bound = 1.0 / jnp.sqrt(jnp.float32(fin))
            w = jax.random.uniform(kw, (fout, fin), jnp.float32, -bound, bound)
            b = jax.random.uniform(kb, (fout,), jnp.float32, -bound, bound)
            w_t = jnp.asarray(w.T)                                # (Fin, Fout)
            raw.append((w_t, b))

            # Pad only *hidden* feature dims to 128 (one-time cost at build):
            # first layer keeps the true input width, last layer keeps the
            # true output width, so the per-call wrapper never pads or slices
            # activations (no extra HBM passes).
            fin_p = _round_up(fin, _LANE) if i > 0 else fin
            fout_p = _round_up(fout, _LANE) if i < num_layers - 1 else fout
            w_p = jnp.zeros((fin_p, fout_p), jnp.float32).at[:fin, :fout].set(w_t)
            b_p = jnp.zeros((1, fout_p), jnp.float32).at[0, :fout].set(b)
            padded.append((w_p, b_p))
            fin = fout
        self.params = raw
        self.padded_params = padded

    def __call__(self, x):
        if self.params is None:
            self._build(x.shape[1], jax.random.PRNGKey(42))
        return fused_mlp(x, self.padded_params, self.output_sizes[-1])


if __name__ == "__main__":
    # Small shapes consistent with the module: batch=8, in_features=32,
    # output_sizes=[64, 32].
    key = jax.random.PRNGKey(0)
    x = jax.random.normal(key, (8, 32), jnp.float32)

    mlp = MLPPallas(output_sizes=[64, 32])
    y = jax.block_until_ready(mlp(x))
    assert y.shape == (8, 32)

    # Pure-JAX reference (exact f32 matmuls) for semantics check.
    ref = x
    for w_t, b in mlp.params:
        ref = jnp.dot(ref, w_t, precision=jax.lax.Precision.HIGHEST) + b
    err = float(jnp.max(jnp.abs(y - ref)))
    assert jnp.allclose(y, ref, atol=1e-4, rtol=1e-4), err

    print("KERNEL_OK")
</pallas_src>

<mosaic_0001>
module attributes {stable_mosaic.version = 11 : i64} {
  func.func @kernel(%arg0: i32, %arg1: memref<8x32xf32, #tpu.memory_space<vmem>>, %arg2: memref<32x128xf32, #tpu.memory_space<vmem>>, %arg3: memref<1x128xf32, #tpu.memory_space<vmem>>, %arg4: memref<128x32xf32, #tpu.memory_space<vmem>>, %arg5: memref<1x32xf32, #tpu.memory_space<vmem>>, %arg6: memref<8x32xf32, #tpu.memory_space<vmem>>) attributes {dimension_semantics = [#tpu.dimension_semantics<parallel>], iteration_bounds = array<i64: 1>, scalar_prefetch = 0 : i64, scratch_operands = 0 : i64, tpu.core_type = #tpu.core_type<tc>, window_params = [{transform_indices = @transform_0, window_bounds = array<i64: 8, 32>}, {pipeline_mode = #tpu.pipeline_mode<synchronous>, transform_indices = @transform_1, window_bounds = array<i64: 32, 128>}, {pipeline_mode = #tpu.pipeline_mode<synchronous>, transform_indices = @transform_2, window_bounds = array<i64: 1, 128>}, {pipeline_mode = #tpu.pipeline_mode<synchronous>, transform_indices = @transform_3, window_bounds = array<i64: 128, 32>}, {pipeline_mode = #tpu.pipeline_mode<synchronous>, transform_indices = @transform_4, window_bounds = array<i64: 1, 32>}, {transform_indices = @transform_5, window_bounds = array<i64: 8, 32>}]} {
    %c0 = arith.constant 0 : index
    %c0_0 = arith.constant 0 : index
    %0 = vector.load %arg1[%c0, %c0_0] : memref<8x32xf32, #tpu.memory_space<vmem>>, vector<8x32xf32>
    %c0_1 = arith.constant 0 : index
    %c0_2 = arith.constant 0 : index
    %1 = vector.load %arg2[%c0_1, %c0_2] : memref<32x128xf32, #tpu.memory_space<vmem>>, vector<32x128xf32>
    %c0_3 = arith.constant 0 : index
    %c0_4 = arith.constant 0 : index
    %2 = vector.load %arg3[%c0_3, %c0_4] : memref<1x128xf32, #tpu.memory_space<vmem>>, vector<1x128xf32>
    %cst = arith.constant dense<0.000000e+00> : vector<8x128xf32>
    %3 = tpu.matmul %0, %1, %cst {dimension_numbers = #tpu.dot_dimension_numbers<[1], [0], [0], [1], [0, 0, 1, 1], [], []>, precision = #tpu.contract_precision<fp32>} : vector<8x32xf32>, vector<32x128xf32>, vector<8x128xf32> -> vector<8x128xf32>
    %4 = vector.broadcast %2 : vector<1x128xf32> to vector<8x128xf32>
    %5 = arith.addf %3, %4 : vector<8x128xf32>
    %c0_5 = arith.constant 0 : index
    %c0_6 = arith.constant 0 : index
    %6 = vector.load %arg4[%c0_5, %c0_6] : memref<128x32xf32, #tpu.memory_space<vmem>>, vector<128x32xf32>
    %c0_7 = arith.constant 0 : index
    %c0_8 = arith.constant 0 : index
    %7 = vector.load %arg5[%c0_7, %c0_8] : memref<1x32xf32, #tpu.memory_space<vmem>>, vector<1x32xf32>
    %cst_9 = arith.constant dense<0.000000e+00> : vector<8x32xf32>
    %8 = tpu.matmul %5, %6, %cst_9 {dimension_numbers = #tpu.dot_dimension_numbers<[1], [0], [0], [1], [0, 0, 1, 1], [], []>, precision = #tpu.contract_precision<fp32>} : vector<8x128xf32>, vector<128x32xf32>, vector<8x32xf32> -> vector<8x32xf32>
    %9 = vector.broadcast %7 : vector<1x32xf32> to vector<8x32xf32>
    %10 = arith.addf %8, %9 : vector<8x32xf32>
    %c0_10 = arith.constant 0 : index
    %c0_11 = arith.constant 0 : index
    %11 = vector.load %arg6[%c0_10, %c0_11] : memref<8x32xf32, #tpu.memory_space<vmem>>, vector<8x32xf32>
    tpu.vector_store %arg6[%c0_10, %c0_11], %10 {strides = array<i32>} : memref<8x32xf32, #tpu.memory_space<vmem>>, vector<8x32xf32>,
    return
  }
  func.func @transform_0(%arg0: i32) -> (i32, i32) {
    %c0_i32 = arith.constant 0 : i32
    %c0_i32_0 = arith.constant 0 : i32
    return %arg0, %c0_i32 : i32, i32
  }
  func.func @transform_1(%arg0: i32) -> (i32, i32) {
    %c0_i32 = arith.constant 0 : i32
    %c0_i32_0 = arith.constant 0 : i32
    %c0_i32_1 = arith.constant 0 : i32
    return %c0_i32, %c0_i32_0 : i32, i32
  }
  func.func @transform_2(%arg0: i32) -> (i32, i32) {
    %c0_i32 = arith.constant 0 : i32
    %c0_i32_0 = arith.constant 0 : i32
    %c0_i32_1 = arith.constant 0 : i32
    return %c0_i32, %c0_i32_0 : i32, i32
  }
  func.func @transform_3(%arg0: i32) -> (i32, i32) {
    %c0_i32 = arith.constant 0 : i32
    %c0_i32_0 = arith.constant 0 : i32
    %c0_i32_1 = arith.constant 0 : i32
    return %c0_i32, %c0_i32_0 : i32, i32
  }
  func.func @transform_4(%arg0: i32) -> (i32, i32) {
    %c0_i32 = arith.constant 0 : i32
    %c0_i32_0 = arith.constant 0 : i32
    %c0_i32_1 = arith.constant 0 : i32
    return %c0_i32, %c0_i32_0 : i32, i32
  }
  func.func @transform_5(%arg0: i32) -> (i32, i32) {
    %c0_i32 = arith.constant 0 : i32
    %c0_i32_0 = arith.constant 0 : i32
    return %arg0, %c0_i32 : i32, i32
  }
}

module attributes {stable_mosaic.version = 11 : i64} {
  func.func @kernel(%arg0: i32, %arg1: memref<8x32xf32, #tpu.memory_space<vmem>>, %arg2: memref<32x128xf32, #tpu.memory_space<vmem>>, %arg3: memref<1x128xf32, #tpu.memory_space<vmem>>, %arg4: memref<128x32xf32, #tpu.memory_space<vmem>>, %arg5: memref<1x32xf32, #tpu.memory_space<vmem>>, %arg6: memref<8x32xf32, #tpu.memory_space<vmem>>) attributes {dimension_semantics = [#tpu.dimension_semantics<parallel>], iteration_bounds = array<i64: 1>, scalar_prefetch = 0 : i64, scratch_operands = 0 : i64, tpu.core_type = #tpu.core_type<tc>, window_params = [{transform_indices = @transform_0, window_bounds = array<i64: 8, 32>}, {pipeline_mode = #tpu.pipeline_mode<synchronous>, transform_indices = @transform_1, window_bounds = array<i64: 32, 128>}, {pipeline_mode = #tpu.pipeline_mode<synchronous>, transform_indices = @transform_2, window_bounds = array<i64: 1, 128>}, {pipeline_mode = #tpu.pipeline_mode<synchronous>, transform_indices = @transform_3, window_bounds = array<i64: 128, 32>}, {pipeline_mode = #tpu.pipeline_mode<synchronous>, transform_indices = @transform_4, window_bounds = array<i64: 1, 32>}, {transform_indices = @transform_5, window_bounds = array<i64: 8, 32>}]} {
    %c0 = arith.constant 0 : index
    %c0_0 = arith.constant 0 : index
    %0 = vector.load %arg1[%c0, %c0_0] : memref<8x32xf32, #tpu.memory_space<vmem>>, vector<8x32xf32>
    %c0_1 = arith.constant 0 : index
    %c0_2 = arith.constant 0 : index
    %1 = vector.load %arg2[%c0_1, %c0_2] : memref<32x128xf32, #tpu.memory_space<vmem>>, vector<32x128xf32>
    %c0_3 = arith.constant 0 : index
    %c0_4 = arith.constant 0 : index
    %2 = vector.load %arg3[%c0_3, %c0_4] : memref<1x128xf32, #tpu.memory_space<vmem>>, vector<1x128xf32>
    %cst = arith.constant dense<0.000000e+00> : vector<8x128xf32>
    %3 = tpu.matmul %0, %1, %cst {dimension_numbers = #tpu.dot_dimension_numbers<[1], [0], [0], [1], [0, 0, 1, 1], [], []>, precision = #tpu.contract_precision<fp32>} : vector<8x32xf32>, vector<32x128xf32>, vector<8x128xf32> -> vector<8x128xf32>
    %4 = vector.broadcast %2 : vector<1x128xf32> to vector<8x128xf32>
    %5 = arith.addf %3, %4 : vector<8x128xf32>
    %c0_5 = arith.constant 0 : index
    %c0_6 = arith.constant 0 : index
    %6 = vector.load %arg4[%c0_5, %c0_6] : memref<128x32xf32, #tpu.memory_space<vmem>>, vector<128x32xf32>
    %c0_7 = arith.constant 0 : index
    %c0_8 = arith.constant 0 : index
    %7 = vector.load %arg5[%c0_7, %c0_8] : memref<1x32xf32, #tpu.memory_space<vmem>>, vector<1x32xf32>
    %cst_9 = arith.constant dense<0.000000e+00> : vector<8x32xf32>
    %8 = tpu.matmul %5, %6, %cst_9 {dimension_numbers = #tpu.dot_dimension_numbers<[1], [0], [0], [1], [0, 0, 1, 1], [], []>, precision = #tpu.contract_precision<fp32>} : vector<8x128xf32>, vector<128x32xf32>, vector<8x32xf32> -> vector<8x32xf32>
    %9 = vector.broadcast %7 : vector<1x32xf32> to vector<8x32xf32>
    %10 = arith.addf %8, %9 : vector<8x32xf32>
    %c0_10 = arith.constant 0 : index
    %c0_11 = arith.constant 0 : index
    %11 = vector.load %arg6[%c0_10, %c0_11] : memref<8x32xf32, #tpu.memory_space<vmem>>, vector<8x32xf32>
    tpu.vector_store %arg6[%c0_10, %c0_11], %10 {strides = array<i32>} : memref<8x32xf32, #tpu.memory_space<vmem>>, vector<8x32xf32>,
    return
  }
  func.func @transform_0(%arg0: i32) -> (i32, i32) {
    %c0_i32 = arith.constant 0 : i32
    %c0_i32_0 = arith.constant 0 : i32
    return %arg0, %c0_i32 : i32, i32
  }
  func.func @transform_1(%arg0: i32) -> (i32, i32) {
    %c0_i32 = arith.constant 0 : i32
    %c0_i32_0 = arith.constant 0 : i32
    %c0_i32_1 = arith.constant 0 : i32
    return %c0_i32, %c0_i32_0 : i32, i32
  }
  func.func @transform_2(%arg0: i32) -> (i32, i32) {
    %c0_i32 = arith.constant 0 : i32
    %c0_i32_0 = arith.constant 0 : i32
    %c0_i32_1 = arith.constant 0 : i32
    return %c0_i32, %c0_i32_0 : i32, i32
  }
  func.func @transform_3(%arg0: i32) -> (i32, i32) {
    %c0_i32 = arith.constant 0 : i32
    %c0_i32_0 = arith.constant 0 : i32
    %c0_i32_1 = arith.constant 0 : i32
    return %c0_i32, %c0_i32_0 : i32, i32
  }
  func.func @transform_4(%arg0: i32) -> (i32, i32) {
    %c0_i32 = arith.constant 0 : i32
    %c0_i32_0 = arith.constant 0 : i32
    %c0_i32_1 = arith.constant 0 : i32
    return %c0_i32, %c0_i32_0 : i32, i32
  }
  func.func @transform_5(%arg0: i32) -> (i32, i32) {
    %c0_i32 = arith.constant 0 : i32
    %c0_i32_0 = arith.constant 0 : i32
    return %arg0, %c0_i32 : i32, i32
  }
}

</mosaic_0001>

<bundles_post_ra>
// kernel: tpu_custom_call.1
= control target key start
LH: loop header
LB: loop body
LE: loop exit
PB: predicated region body
PF: predicated region fallthrough
CT: control target
= control target key end

     0   :  { %vm33_vm0 = vcmask 261120   ;;  %v1636_v3 = vmov 0.0   ;;  %vm1637_vm1 = vmmov 0   ;;  %s2187_s0 = inlined_call_operand.vmem [shape: f32[8,32], index: 0, kind: input, shape index: {}]   ;;  %s2188_s1 = inlined_call_operand.vmem [shape: f32[32,128], index: 1, kind: input, shape index: {}]   ;;  %s2189_s2 = inlined_call_operand.vmem [shape: f32[1,128], index: 2, kind: input, shape index: {}]   ;;  %s2190_s3 = inlined_call_operand.vmem [shape: f32[128,32], index: 3, kind: input, shape index: {}]   ;;  %s2191_s4 = inlined_call_operand.vmem [shape: f32[1,32], index: 4, kind: input, shape index: {}]   ;;  %s2192_s5 = inlined_call_operand.hbm [shape: f32[8,32], index: 5, kind: output, shape index: {}]  }
   0x1   :  { %v25_v0 = vld [vmem:[%s2188_s1 + $0x18] sm:$0xff]  ;;  %v24_v1 = vld [vmem:[%s2188_s1 + $0x10] sm:$0xff]  ;;  %v23_v2 = vld [vmem:[%s2188_s1 + $0x8] sm:$0xff]  ;;  %1335 = vmatprep.subr.mxu0 %v1636_v3  ;;  %1346 = vmatprep.subr.mxu1 %v1636_v3 }
   0x2   :  { %v1679_v4 = vand.u32 4294901760, %v25_v0  ;;  %v1681_v5 = vand.u32 4294901760, %v24_v1  ;;  %v1683_v6 = vand.u32 4294901760, %v23_v2  ;;  %v22_v7 = vld [vmem:[%s2188_s1] sm:$0xff]  ;;  %1343 = vmatprep.mubr.msk.f32.mxu0 %vm1637_vm1, %v1636_v3  ;;  %1354 = vmatprep.mubr.msk.f32.mxu1 %vm1637_vm1, %v1636_v3 }
   0x3   :  { %v21_v8 = vld [vmem:[%s2187_s0] sm:$0xff]  ;;  %v1692_v9 = vand.u32 4294901760, %v22_v7 }
   0x4   :  { %v35_v10 = vsel %vm33_vm0, %v21_v8, 0  ;;  %1336 = vmatpush3.msra.mxu0 %v1679_v4  ;;  %v142_v11 = vsub.f32 %v25_v0, %v1679_v4  ;;  %v149_v13 = vsub.f32 %v24_v1, %v1681_v5  ;;  %v1705_v14 = vsub.f32 %v23_v2, %v1683_v6 }
   0x5   :  { %v1701_v12 = vand.u32 4294901760, %v35_v10 }
   0x6   :  { %10 = vsyncpa [#allocation3], 0  ;;  %1337 = vmatprep.subr.mxu0 %v1636_v3  ;;  %v1709_v15 = vsub.f32 %v22_v7, %v1692_v9  ;;  %v143_v16 = vand.u32 4294901760, %v142_v11  ;;  %v150_v18 = vand.u32 4294901760, %v149_v13  ;;  %v157_v19 = vand.u32 4294901760, %v1705_v14  ;;  %v537_v32 = vld [vmem:[%s2190_s3 + $0x78] sm:$0xff] }
   0x7   :  { %1338 = vmatpush3.msra.mxu0 %v1681_v5  ;;  %v1713_v17 = vsub.f32 %v35_v10, %v1701_v12  ;;  %v536_v33 = vld [vmem:[%s2190_s3 + $0x70] sm:$0xff]  ;;  %v1743_v34 = vand.u32 4294901760, %v537_v32  ;;  %v535_v35 = vld [vmem:[%s2190_s3 + $0x68] sm:$0xff]  ;;  %v534_v37 = vld [vmem:[%s2190_s3 + $0x60] sm:$0xff]  ;;  %s1638_s8 = smov [#allocation2]  }
   0x8   :  { %1339 = vmatprep.subr.mxu0 %v1636_v3  ;;  %v164_v20 = vand.u32 4294901760, %v1709_v15  ;;  %v144_v21 = vsub.f32 %v142_v11, %v143_v16  ;;  %v151_v23 = vsub.f32 %v149_v13, %v150_v18  ;;  %v158_v24 = vsub.f32 %v1705_v14, %v157_v19  ;;  %v533_v56 = vld [vmem:[%s2190_s3 + $0x58] sm:$0xff]  ;;  %v532_v58 = vld [vmem:[%s2190_s3 + $0x50] sm:$0xff]  ;;  %v531_v61 = vld [vmem:[%s2190_s3 + $0x48] sm:$0xff]  ;;  %s1193_s9 = sshll.u32 %s1638_s8, 4  ;;  %s1194_s9 = int_to_ptr.vmem [resolvable:$true] %s1193_s9 }
   0x9   :  { %1340 = vmatpush3.msra.mxu0 %v1683_v6  ;;  %v108_v22 = vand.u32 4294901760, %v1713_v17  ;;  %v1753_v36 = vand.u32 4294901760, %v536_v33  ;;  %v1762_v38 = vsub.f32 %v537_v32, %v1743_v34  ;;  %v1764_v39 = vand.u32 4294901760, %v535_v35  ;;  %v530_v1 = vld [vmem:[%s2190_s3 + $0x40] sm:$0xff]  ;;  %v529_v7 = vld [vmem:[%s2190_s3 + $0x38] sm:$0xff]  ;;  %s1614_s10 = scalar_lea.vmem %s1194_s9, 128  ;;  %p1619_p1 = scmp.lt.s32.totalorder %s1194_s9, %s1194_s9 }
   0xa   :  { %1341 = vmatprep.subr.mxu0 %v1636_v3  ;;  %v145_v25 = vand.u32 4294901760, %v144_v21  ;;  %v152_v27 = vand.u32 4294901760, %v151_v23  ;;  %v165_v28 = vsub.f32 %v1709_v15, %v164_v20  ;;  %v159_v30 = vand.u32 4294901760, %v158_v24  ;;  %p1615_p0 = scmp.ne.s32.totalorder %s1194_s9, %s1614_s10  ;;  %p1620_p2 = scmp.lt.s32.totalorder %s1614_s10, %s1614_s10 }
   0xb   :  { %1342 = vmatpush3.msra.mxu0 %v1692_v9  ;;  %v109_v26 = vsub.f32 %v1713_v17, %v108_v22  ;;  %v1770_v40 = vsub.f32 %v536_v33, %v1753_v36  ;;  %v1772_v41 = vand.u32 4294901760, %v534_v37  ;;  %v639_v42 = vand.u32 4294901760, %v1762_v38 }
   0xc   :  { %1357 = vmatprep.subr.mxu0 %v1636_v3  ;;  %1347 = vmatpush3.msra.mxu1 %v145_v25  ;;  %v166_v31 = vand.u32 4294901760, %v165_v28  ;;  %v1781_v43 = vsub.f32 %v535_v35, %v1764_v39  ;;  %v1839_v57 = vand.u32 4294901760, %v533_v56  ;;  %v1847_v60 = vand.u32 4294901760, %v532_v58  ;;  %v526_v25 = vld [vmem:[%s2190_s3 + $0x20] sm:$0xff]  ;;  %p1621_p3 = por %p1620_p2, %p1619_p1 }
   0xd   :  { %v110_v29 = vand.u32 4294901760, %v109_v26  ;;  %1348 = vmatprep.subr.mxu1 %v1636_v3  ;;  %v646_v44 = vand.u32 4294901760, %v1770_v40  ;;  %v1787_v45 = vsub.f32 %v534_v37, %v1772_v41  ;;  %v640_v46 = vsub.f32 %v1762_v38, %v639_v42 }
   0xe   :  { %1349 = vmatpush3.msra.mxu1 %v152_v27  ;;  %v653_v47 = vand.u32 4294901760, %v1781_v43  ;;  %v1845_v59 = vsub.f32 %v533_v56, %v1839_v57  ;;  %v1856_v63 = vsub.f32 %v532_v58, %v1847_v60  ;;  %v1858_v0 = vand.u32 4294901760, %v531_v61  ;;  %p1622_p4 = pnand %p1621_p3, %p1615_p0 }
   0xf   :  { %1344 = vmatmul.mubr.f32.vlgmr.msra.gmra.mxu0 %v110_v29  ;;  %1350 = vmatprep.subr.mxu1 %v1636_v3  ;;  %v647_v48 = vsub.f32 %v1770_v40, %v646_v44  ;;  %v660_v49 = vand.u32 4294901760, %v1787_v45  ;;  %v641_v50 = vand.u32 4294901760, %v640_v46  ;;  %v1926_v29 = vand.u32 4294901760, %v526_v25 }
  0x10   :  { %1358 = vmatpush3.msra.mxu0 %v142_v11  ;;  %1351 = vmatpush3.msra.mxu1 %v159_v30  ;;  %v654_v51 = vsub.f32 %v1781_v43, %v653_v47  ;;  %v667_v62 = vand.u32 4294901760, %v1845_v59 }
  0x11   :  { %1359 = vmatprep.subr.mxu0 %v1636_v3  ;;  %1352 = vmatprep.subr.mxu1 %v1636_v3  ;;  %v648_v52 = vand.u32 4294901760, %v647_v48  ;;  %v661_v53 = vsub.f32 %v1787_v45, %v660_v49  ;;  %v1942_v35 = vsub.f32 %v526_v25, %v1926_v29  ;;  %v524_v48 = vld [vmem:[%s2190_s3 + $0x10] sm:$0xff] }
  0x12   :  { %1360 = vmatpush3.msra.mxu0 %v149_v13  ;;  %1353 = vmatpush3.msra.mxu1 %v166_v31  ;;  %v655_v54 = vand.u32 4294901760, %v654_v51  ;;  %v668_v2 = vsub.f32 %v1845_v59, %v667_v62  ;;  %v528_v13 = vld [vmem:[%s2190_s3 + $0x30] sm:$0xff]  ;;  %v525_v31 = vld [vmem:[%s2190_s3 + $0x18] sm:$0xff] }
  0x13   :  { %1361 = vmatprep.subr.mxu0 %v1636_v3  ;;  %1355 = vmatmul.mubr.f32.vlgmr.msra.gmra.mxu1 %v1701_v12  ;;  %v662_v55 = vand.u32 4294901760, %v661_v53  ;;  %v1944_v37 = vand.u32 4294901760, %v525_v31 }
  0x14   :  { %1362 = vmatpush3.msra.mxu0 %v1705_v14  ;;  %1368 = vmatprep.subr.mxu1 %v1636_v3  ;;  %v669_v8 = vand.u32 4294901760, %v668_v2 }
  0x15   :  { %1363 = vmatprep.subr.mxu0 %v1636_v3  ;;  %1369 = vmatpush3.msra.mxu1 %v1679_v4  ;;  %v1957_v53 = vsub.f32 %v525_v31, %v1944_v37 }
  0x16   :  { %1364 = vmatpush3.msra.mxu0 %v1709_v15  ;;  %1365 = vmatprep.mubr.msk.f32.mxu0 %vm1637_vm1, %v1636_v3 }
  0x17   :  { %1370 = vmatprep.subr.mxu1 %v1636_v3  ;;  %1379 = vmatprep.subr.mxu0 %v1636_v3 }
  0x18   :  { %1366 = vmatmul.mubr.f32.vlgmr.msra.gmra.mxu0 %v1713_v17  ;;  %1371 = vmatpush3.msra.mxu1 %v1681_v5  ;;  %v1897_v17 = vand.u32 4294901760, %v528_v13 }
  0x19   :  { %1380 = vmatpush3.msra.mxu0 %v143_v16  ;;  %1372 = vmatprep.subr.mxu1 %v1636_v3 }
  0x1a   :  { %1381 = vmatprep.subr.mxu0 %v1636_v3  ;;  %1373 = vmatpush3.msra.mxu1 %v1683_v6 }
  0x1b   :  { %1382 = vmatpush3.msra.mxu0 %v150_v18  ;;  %1374 = vmatprep.subr.mxu1 %v1636_v3 }
  0x1c   :  { %1383 = vmatprep.subr.mxu0 %v1636_v3  ;;  %1375 = vmatpush3.msra.mxu1 %v1692_v9 }
  0x1d   :  { %1376 = vmatprep.mubr.msk.f32.mxu1 %vm1637_vm1, %v1636_v3  ;;  %1384 = vmatpush3.msra.mxu0 %v157_v19  ;;  %v527_v19 = vld [vmem:[%s2190_s3 + $0x28] sm:$0xff] }
  0x1e   :  { %1377 = vmatmul.mubr.f32.vlgmr.msra.gmra.mxu1 %v108_v22  ;;  %1385 = vmatprep.subr.mxu0 %v1636_v3  ;;  %v1911_v22 = vsub.f32 %v528_v13, %v1897_v17  ;;  %v1913_v23 = vand.u32 4294901760, %v527_v19 }
  0x1f   :  { %1390 = vmatprep.subr.mxu1 %v1636_v3  ;;  %1386 = vmatpush3.msra.mxu0 %v164_v20 }
  0x20   :  { %1387 = vmatprep.mubr.msk.f32.mxu0 %vm1637_vm1, %v1636_v3  ;;  %1391 = vmatpush3.msra.mxu1 %v1679_v4  ;;  %v674_v4 = vand.u32 4294901760, %v1856_v63  ;;  %v702_v27 = vand.u32 4294901760, %v1911_v22  ;;  %v1924_v28 = vsub.f32 %v527_v19, %v1913_v23 }
  0x21   :  { %1388 = vmatmul.mubr.f32.vlgmr.msra.gmra.mxu0 %v1701_v12  ;;  %1392 = vmatprep.subr.mxu1 %v1636_v3 }
  0x22   :  { %1398 = vmatprep.mubr.msk.f32.mxu1 %vm1637_vm1, %v1636_v3  ;;  %1393 = vmatpush3.msra.mxu1 %v1681_v5  ;;  %v1870_v5 = vsub.f32 %v531_v61, %v1858_v0  ;;  %v703_v32 = vsub.f32 %v1911_v22, %v702_v27  ;;  %v709_v33 = vand.u32 4294901760, %v1924_v28  ;;  %v2196_v61 = vand.u32 4294901760, %v1957_v53 }
  0x23   :  { %1401 = vmatprep.subr.mxu0 %v1636_v3  ;;  %1394 = vmatprep.subr.mxu1 %v1636_v3 }
  0x24   :  { %1402 = vmatpush3.msra.mxu0 %v1743_v34  ;;  %1395 = vmatpush3.msra.mxu1 %v1683_v6  ;;  %v1872_v6 = vand.u32 4294901760, %v530_v1  ;;  %v681_v10 = vand.u32 4294901760, %v1870_v5  ;;  %v710_v51 = vsub.f32 %v1924_v28, %v709_v33 }
  0x25   :  { %1403 = vmatprep.subr.mxu0 %v1636_v3  ;;  %1396 = vmatprep.subr.mxu1 %v1636_v3 }
  0x26   :  { %1404 = vmatpush3.msra.mxu0 %v1753_v36  ;;  %1397 = vmatpush3.msra.mxu1 %v1692_v9  ;;  %v675_v9 = vsub.f32 %v1856_v63, %v674_v4  ;;  %v1884_v11 = vsub.f32 %v530_v1, %v1872_v6  ;;  %v682_v15 = vsub.f32 %v1870_v5, %v681_v10  ;;  %v711_v56 = vand.u32 4294901760, %v710_v51 }
  0x27   :  { %1405 = vmatprep.subr.mxu0 %v1636_v3  ;;  %1399 = vmatmul.mubr.f32.vlgmr.msra.gmra.mxu1 %v1701_v12  ;;  %v1887_v12 = vand.u32 4294901760, %v529_v7 }
  0x28   :  { %1436 = vmatprep.subr.mxu1 %v1636_v3  ;;  %1406 = vmatpush3.msra.mxu0 %v1764_v39  ;;  %v676_v14 = vand.u32 4294901760, %v675_v9  ;;  %v688_v16 = vand.u32 4294901760, %v1884_v11  ;;  %v683_v20 = vand.u32 4294901760, %v682_v15  ;;  %v724_v9 = vsub.f32 %v1957_v53, %v2196_v61 }
  0x29   :  { %1437 = vmatpush3.msra.mxu1 %v641_v50  ;;  %1407 = vmatprep.subr.mxu0 %v1636_v3  ;;  %v1901_v18 = vsub.f32 %v529_v7, %v1887_v12  ;;  %v704_v50 = vand.u32 4294901760, %v703_v32  ;;  %v522_v7 = vld [vmem:[%s2190_s3] sm:$0xff] }
  0x2a   :  { %1438 = vmatprep.subr.mxu1 %v1636_v3  ;;  %1408 = vmatpush3.msra.mxu0 %v1772_v41  ;;  %v689_v21 = vsub.f32 %v1884_v11, %v688_v16  ;;  %v725_v19 = vand.u32 4294901760, %v724_v9 }
  0x2b   :  { %1439 = vmatpush3.msra.mxu1 %v648_v52  ;;  %1409 = vmatprep.subr.mxu0 %v1636_v3  ;;  %v695_v24 = vand.u32 4294901760, %v1901_v18  ;;  %v2197_v52 = vand.u32 4294901760, %v1942_v35 }
  0x2c   :  { %1440 = vmatprep.subr.mxu1 %v1636_v3  ;;  %1468 = vmatprep.mubr.msk.f32.mxu1 %vm1637_vm1, %v1636_v3  ;;  %v690_v26 = vand.u32 4294901760, %v689_v21 }
  0x2d   :  { %1441 = vmatpush3.msra.mxu1 %v655_v54  ;;  %1433 = vmatprep.mubr.msk.f32.mxu0 %vm1637_vm1, %v1636_v3  ;;  %v696_v30 = vsub.f32 %v1901_v18, %v695_v24  ;;  %v1960_v54 = vand.u32 4294901760, %v524_v48  ;;  %v717_v58 = vsub.f32 %v1942_v35, %v2197_v52 }
  0x2e   :  { %1442 = vmatprep.subr.mxu1 %v1636_v3  ;;  %1410 = vmatpush3.msra.mxu0 %v1839_v57 }
  0x2f   :  { %1443 = vmatpush3.msra.mxu1 %v662_v55  ;;  %1411 = vmatprep.subr.mxu0 %v1636_v3  ;;  %v697_v46 = vand.u32 4294901760, %v696_v30  ;;  %v523_v55 = vld [vmem:[%s2190_s3 + $0x8] sm:$0xff]  ;;  %v1975_v2 = vsub.f32 %v524_v48, %v1960_v54 }
  0x30   :  { %1444 = vmatprep.subr.mxu1 %v1636_v3  ;;  %1412 = vmatpush3.msra.mxu0 %v1847_v60  ;;  %v1971_v1 = vand.u32 4294901760, %v523_v55 }
  0x31   :  { %1413 = vmatprep.subr.mxu0 %v1636_v3  ;;  %1445 = vmatpush3.msra.mxu1 %v669_v8  ;;  %v718_v8 = vand.u32 4294901760, %v717_v58  ;;  %v2195_v15 = vand.u32 4294901760, %v1975_v2 }
  0x32   :  { %1414 = vmatpush3.msra.mxu0 %v1858_v0  ;;  %1446 = vmatprep.subr.mxu1 %v1636_v3  ;;  %v1986_v13 = vsub.f32 %v523_v55, %v1971_v1 }
  0x33   :  { %1415 = vmatprep.subr.mxu0 %v1636_v3  ;;  %1447 = vmatpush3.msra.mxu1 %v676_v14  ;;  %v1988_v14 = vand.u32 4294901760, %v522_v7  ;;  %v731_v25 = vsub.f32 %v1975_v2, %v2195_v15 }
  0x34   :  { %1416 = vmatpush3.msra.mxu0 %v1872_v6  ;;  %1448 = vmatprep.subr.mxu1 %v1636_v3 }
  0x35   :  { %1417 = vmatprep.subr.mxu0 %v1636_v3  ;;  %1449 = vmatpush3.msra.mxu1 %v683_v20  ;;  %v2194_v20 = vand.u32 4294901760, %v1986_v13  ;;  %v1996_v21 = vsub.f32 %v522_v7, %v1988_v14  ;;  %v732_v31 = vand.u32 4294901760, %v731_v25 }
  0x36   :  { %1418 = vmatpush3.msra.mxu0 %v1887_v12  ;;  %1450 = vmatprep.subr.mxu1 %v1636_v3 }
  0x37   :  { %1419 = vmatprep.subr.mxu0 %v1636_v3  ;;  %1451 = vmatpush3.msra.mxu1 %v690_v26  ;;  %v738_v26 = vsub.f32 %v1986_v13, %v2194_v20  ;;  %v2193_v30 = vand.u32 4294901760, %v1996_v21 }
  0x38   :  { %1420 = vmatpush3.msra.mxu0 %v1897_v17  ;;  %1452 = vmatprep.subr.mxu1 %v1636_v3 }
  0x39   :  { %1421 = vmatprep.subr.mxu0 %v1636_v3  ;;  %1453 = vmatpush3.msra.mxu1 %v697_v46  ;;  %v739_v32 = vand.u32 4294901760, %v738_v26  ;;  %v745_v46 = vsub.f32 %v1996_v21, %v2193_v30 }
  0x3a   :  { %1422 = vmatpush3.msra.mxu0 %v1913_v23  ;;  %1454 = vmatprep.subr.mxu1 %v1636_v3 }
  0x3b   :  { %1423 = vmatprep.subr.mxu0 %v1636_v3  ;;  %1455 = vmatpush3.msra.mxu1 %v704_v50  ;;  %v746_v48 = vand.u32 4294901760, %v745_v46 }
  0x3c   :  { %1424 = vmatpush3.msra.mxu0 %v1926_v29  ;;  %1456 = vmatprep.subr.mxu1 %v1636_v3 }
  0x3d   :  { %1425 = vmatprep.subr.mxu0 %v1636_v3  ;;  %1457 = vmatpush3.msra.mxu1 %v711_v56  ;;  %v1201_v56 = vld [vmem:[%s2189_s2] ss:$0 sm:$0xff] }
  0x3e   :  { %1426 = vmatpush3.msra.mxu0 %v1944_v37  ;;  %1458 = vmatprep.subr.mxu1 %v1636_v3 }
  0x3f   :  { %1427 = vmatprep.subr.mxu0 %v1636_v3  ;;  %1459 = vmatpush3.msra.mxu1 %v718_v8 }
  0x40   :  { %1428 = vmatpush3.msra.mxu0 %v1960_v54  ;;  %1460 = vmatprep.subr.mxu1 %v1636_v3 }
  0x41   :  { %1429 = vmatprep.subr.mxu0 %v1636_v3  ;;  %1461 = vmatpush3.msra.mxu1 %v725_v19 }
  0x42   :  { %1430 = vmatpush3.msra.mxu0 %v1971_v1  ;;  %1462 = vmatprep.subr.mxu1 %v1636_v3 }
  0x43   :  { %1431 = vmatprep.subr.mxu0 %v1636_v3  ;;  %1463 = vmatpush3.msra.mxu1 %v732_v31 }
  0x44   :  { %1432 = vmatpush3.msra.mxu0 %v1988_v14  ;;  %1464 = vmatprep.subr.mxu1 %v1636_v3 }
  0x45   :  { %1471 = vmatprep.subr.mxu0 %v1636_v3  ;;  %1465 = vmatpush3.msra.mxu1 %v739_v32 }
  0x46   :  { %1466 = vmatprep.subr.mxu1 %v1636_v3 }
  0x47   :  { %1467 = vmatpush3.msra.mxu1 %v746_v48 }
  0x48   :  { %1506 = vmatprep.subr.mxu1 %v1636_v3 }
  0xcf   :  { %v112_v50 = vpop.f32.mrf.mxu0 }
  0xd0   :  { %v113_v8 = vadd.f32 %v1201_v56, %v112_v50 }
  0xd1   :  { %v1345_v51 = vpop.f32.mrf.mxu0 }
  0xd3   :  { %v203_v55 = vpop.f32.mrf.mxu1 }
  0xd4   :  { %v204_v19 = vadd.f32 %v203_v55, %v113_v8 }
  0xd5   :  { %v1356_v58 = vpop.f32.mrf.mxu1 }
  0xd8   :  { %v283_v7 = vpop.f32.mrf.mxu0 }
  0xd9   :  { %v284_v31 = vadd.f32 %v283_v7, %v204_v19 }
  0xda   :  { %v1367_v9 = vpop.f32.mrf.mxu0 }
  0xde   :  { %v360_v25 = vpop.f32.mrf.mxu1 }
  0xdf   :  { %v361_v46 = vadd.f32 %v360_v25, %v284_v31 }
  0xe0   :  { %v1378_v26 = vpop.f32.mrf.mxu1 }
  0xe1   :  { %v443_v32 = vpop.f32.mrf.mxu0 }
  0xe2   :  { %v444_v30 = vadd.f32 %v443_v32, %v361_v46 }
  0xe3   :  { %v1389_v48 = vpop.f32.mrf.mxu0 }
  0xe7   :  { %v518_v20 = vpop.f32.mrf.mxu1 }
  0xe8   :  { %v519_v15 = vadd.f32 %v518_v20, %v444_v30 }
  0xe9   :  { %v1400_v51 = vpop.f32.mrf.mxu1 }
  0xea   :  { %v2019_v61 = vand.u32 4294901760, %v519_v15 }
  0xec   :  { %v2022_v52 = vsub.f32 %v519_v15, %v2019_v61  ;;  %1469 = vmatmul.mubr.f32.vlgmr.msra.gmra.mxu1 %v2019_v61 }
  0xed   :  { %1507 = vmatpush3.msra.mxu1 %v1743_v34  ;;  %1538 = vmatprep.mubr.msk.f32.mxu1 %vm1637_vm1, %v1636_v3 }
  0xee   :  { %v628_v50 = vand.u32 4294901760, %v2022_v52  ;;  %1508 = vmatprep.subr.mxu1 %v1636_v3 }
  0xef   :  { %1509 = vmatpush3.msra.mxu1 %v1753_v36 }
  0xf0   :  { %v629_v20 = vsub.f32 %v2022_v52, %v628_v50  ;;  %1510 = vmatprep.subr.mxu1 %v1636_v3 }
  0xf1   :  { %1511 = vmatpush3.msra.mxu1 %v1764_v39 }
  0xf2   :  { %1512 = vmatprep.subr.mxu1 %v1636_v3  ;;  %v630_v15 = vand.u32 4294901760, %v629_v20 }
  0xf3   :  { %1513 = vmatpush3.msra.mxu1 %v1772_v41 }
  0xf4   :  { %1514 = vmatprep.subr.mxu1 %v1636_v3  ;;  %1434 = vmatmul.mubr.f32.vlgmr.msra.gmra.mxu0 %v630_v15 }
  0xf5   :  { %1472 = vmatpush3.msra.mxu0 %v1762_v38  ;;  %1515 = vmatpush3.msra.mxu1 %v1839_v57  ;;  %v2200_v38 = vand.u32 4294901760, %v1975_v2 }
  0xf6   :  { %1473 = vmatprep.subr.mxu0 %v1636_v3  ;;  %1516 = vmatprep.subr.mxu1 %v1636_v3 }
  0xf7   :  { %1474 = vmatpush3.msra.mxu0 %v1770_v40  ;;  %1517 = vmatpush3.msra.mxu1 %v1847_v60  ;;  %v2202_v40 = vand.u32 4294901760, %v1996_v21 }
  0xf8   :  { %1475 = vmatprep.subr.mxu0 %v1636_v3  ;;  %1518 = vmatprep.subr.mxu1 %v1636_v3 }
  0xf9   :  { %1476 = vmatpush3.msra.mxu0 %v1781_v43  ;;  %1519 = vmatpush3.msra.mxu1 %v1858_v0 }
  0xfa   :  { %1477 = vmatprep.subr.mxu0 %v1636_v3  ;;  %1520 = vmatprep.subr.mxu1 %v1636_v3 }
  0xfb   :  { %1478 = vmatpush3.msra.mxu0 %v1787_v45  ;;  %1521 = vmatpush3.msra.mxu1 %v1872_v6 }
  0xfc   :  { %1479 = vmatprep.subr.mxu0 %v1636_v3  ;;  %1522 = vmatprep.subr.mxu1 %v1636_v3 }
  0xfd   :  { %1480 = vmatpush3.msra.mxu0 %v1845_v59  ;;  %1523 = vmatpush3.msra.mxu1 %v1887_v12  ;;  %v1202_v59 = vld [vmem:[%s2191_s4] ss:$0 sm:$0xff] }
  0xfe   :  { %1481 = vmatprep.subr.mxu0 %v1636_v3  ;;  %1524 = vmatprep.subr.mxu1 %v1636_v3 }
  0xff   :  { %1482 = vmatpush3.msra.mxu0 %v1856_v63  ;;  %1525 = vmatpush3.msra.mxu1 %v1897_v17 }
 0x100   :  { %1483 = vmatprep.subr.mxu0 %v1636_v3  ;;  %1526 = vmatprep.subr.mxu1 %v1636_v3 }
 0x101   :  { %1484 = vmatpush3.msra.mxu0 %v1870_v5  ;;  %1527 = vmatpush3.msra.mxu1 %v1913_v23 }
 0x102   :  { %1485 = vmatprep.subr.mxu0 %v1636_v3  ;;  %1528 = vmatprep.subr.mxu1 %v1636_v3 }
 0x103   :  { %1486 = vmatpush3.msra.mxu0 %v1884_v11  ;;  %1529 = vmatpush3.msra.mxu1 %v1926_v29 }
 0x104   :  { %1487 = vmatprep.subr.mxu0 %v1636_v3  ;;  %1530 = vmatprep.subr.mxu1 %v1636_v3 }
 0x105   :  { %1488 = vmatpush3.msra.mxu0 %v1901_v18  ;;  %1531 = vmatpush3.msra.mxu1 %v1944_v37 }
 0x106   :  { %1489 = vmatprep.subr.mxu0 %v1636_v3  ;;  %1532 = vmatprep.subr.mxu1 %v1636_v3 }
 0x107   :  { %1490 = vmatpush3.msra.mxu0 %v1911_v22  ;;  %1533 = vmatpush3.msra.mxu1 %v1960_v54 }
 0x108   :  { %1491 = vmatprep.subr.mxu0 %v1636_v3  ;;  %1534 = vmatprep.subr.mxu1 %v1636_v3 }
 0x109   :  { %1492 = vmatpush3.msra.mxu0 %v1924_v28  ;;  %1535 = vmatpush3.msra.mxu1 %v1971_v1 }
 0x10a   :  { %1493 = vmatprep.subr.mxu0 %v1636_v3  ;;  %1536 = vmatprep.subr.mxu1 %v1636_v3 }
 0x10b   :  { %1494 = vmatpush3.msra.mxu0 %v1942_v35  ;;  %1537 = vmatpush3.msra.mxu1 %v1988_v14 }
 0x10c   :  { %1495 = vmatprep.subr.mxu0 %v1636_v3  ;;  %1539 = vmatmul.mubr.f32.vlgmr.msra.gmra.mxu1 %v628_v50 }
 0x10d   :  { %1576 = vmatprep.subr.mxu1 %v1636_v3  ;;  %1496 = vmatpush3.msra.mxu0 %v1957_v53 }
 0x10e   :  { %1577 = vmatpush3.msra.mxu1 %v1743_v34  ;;  %1497 = vmatprep.subr.mxu0 %v1636_v3  ;;  %v2198_v34 = vand.u32 4294901760, %v1942_v35 }
 0x10f   :  { %1578 = vmatprep.subr.mxu1 %v1636_v3  ;;  %1498 = vmatpush3.msra.mxu0 %v1975_v2 }
 0x110   :  { %1579 = vmatpush3.msra.mxu1 %v1753_v36  ;;  %1499 = vmatprep.subr.mxu0 %v1636_v3  ;;  %v2199_v36 = vand.u32 4294901760, %v1957_v53 }
 0x111   :  { %1580 = vmatprep.subr.mxu1 %v1636_v3  ;;  %1500 = vmatpush3.msra.mxu0 %v1986_v13 }
 0x112   :  { %1581 = vmatpush3.msra.mxu1 %v1764_v39  ;;  %1501 = vmatprep.subr.mxu0 %v1636_v3  ;;  %v2201_v39 = vand.u32 4294901760, %v1986_v13 }
 0x113   :  { %1582 = vmatprep.subr.mxu1 %v1636_v3  ;;  %1502 = vmatpush3.msra.mxu0 %v1996_v21 }
 0x114   :  { %1503 = vmatprep.mubr.msk.f32.mxu0 %vm1637_vm1, %v1636_v3  ;;  %1583 = vmatpush3.msra.mxu1 %v1772_v41 }
 0x115   :  { %1504 = vmatmul.mubr.f32.vlgmr.msra.gmra.mxu0 %v2022_v52  ;;  %1541 = vmatprep.subr.mxu0 %v1636_v3 }
 0x116   :  { %1584 = vmatprep.subr.mxu1 %v1636_v3  ;;  %1542 = vmatpush3.msra.mxu0 %v639_v42 }
 0x117   :  { %1585 = vmatpush3.msra.mxu1 %v1839_v57  ;;  %1543 = vmatprep.subr.mxu0 %v1636_v3 }
 0x118   :  { %1586 = vmatprep.subr.mxu1 %v1636_v3  ;;  %1544 = vmatpush3.msra.mxu0 %v646_v44 }
 0x119   :  { %1587 = vmatpush3.msra.mxu1 %v1847_v60  ;;  %1545 = vmatprep.subr.mxu0 %v1636_v3 }
 0x11a   :  { %1588 = vmatprep.subr.mxu1 %v1636_v3  ;;  %1546 = vmatpush3.msra.mxu0 %v653_v47 }
 0x11b   :  { %1589 = vmatpush3.msra.mxu1 %v1858_v0  ;;  %1547 = vmatprep.subr.mxu0 %v1636_v3 }
 0x11c   :  { %1590 = vmatprep.subr.mxu1 %v1636_v3  ;;  %1548 = vmatpush3.msra.mxu0 %v660_v49 }
 0x11d   :  { %1591 = vmatpush3.msra.mxu1 %v1872_v6  ;;  %1549 = vmatprep.subr.mxu0 %v1636_v3 }
 0x11e   :  { %1592 = vmatprep.subr.mxu1 %v1636_v3  ;;  %1550 = vmatpush3.msra.mxu0 %v667_v62 }
 0x11f   :  { %1593 = vmatpush3.msra.mxu1 %v1887_v12  ;;  %1551 = vmatprep.subr.mxu0 %v1636_v3 }
 0x120   :  { %1594 = vmatprep.subr.mxu1 %v1636_v3  ;;  %1552 = vmatpush3.msra.mxu0 %v674_v4 }
 0x121   :  { %1595 = vmatpush3.msra.mxu1 %v1897_v17  ;;  %1553 = vmatprep.subr.mxu0 %v1636_v3 }
 0x122   :  { %1596 = vmatprep.subr.mxu1 %v1636_v3  ;;  %1554 = vmatpush3.msra.mxu0 %v681_v10 }
 0x123   :  { %1597 = vmatpush3.msra.mxu1 %v1913_v23  ;;  %1555 = vmatprep.subr.mxu0 %v1636_v3 }
 0x124   :  { %1598 = vmatprep.subr.mxu1 %v1636_v3  ;;  %1556 = vmatpush3.msra.mxu0 %v688_v16 }
 0x125   :  { %1599 = vmatpush3.msra.mxu1 %v1926_v29  ;;  %1557 = vmatprep.subr.mxu0 %v1636_v3 }
 0x126   :  { %1600 = vmatprep.subr.mxu1 %v1636_v3  ;;  %1558 = vmatpush3.msra.mxu0 %v695_v24 }
 0x127   :  { %1601 = vmatpush3.msra.mxu1 %v1944_v37  ;;  %1559 = vmatprep.subr.mxu0 %v1636_v3 }
 0x128   :  { %1602 = vmatprep.subr.mxu1 %v1636_v3  ;;  %1560 = vmatpush3.msra.mxu0 %v702_v27 }
 0x129   :  { %1603 = vmatpush3.msra.mxu1 %v1960_v54  ;;  %1561 = vmatprep.subr.mxu0 %v1636_v3 }
 0x12a   :  { %1604 = vmatprep.subr.mxu1 %v1636_v3  ;;  %1562 = vmatpush3.msra.mxu0 %v709_v33 }
 0x12b   :  { %1605 = vmatpush3.msra.mxu1 %v1971_v1  ;;  %1563 = vmatprep.subr.mxu0 %v1636_v3 }
 0x12c   :  { %1606 = vmatprep.subr.mxu1 %v1636_v3  ;;  %1564 = vmatpush3.msra.mxu0 %v2198_v34 }
 0x12d   :  { %1607 = vmatpush3.msra.mxu1 %v1988_v14  ;;  %1608 = vmatprep.mubr.msk.f32.mxu1 %vm1637_vm1, %v1636_v3 }
 0x12e   :  { %1565 = vmatprep.subr.mxu0 %v1636_v3  ;;  %1609 = vmatmul.mubr.f32.vlgmr.msra.gmra.mxu1 %v2019_v61 }
 0x12f   :  { %1566 = vmatpush3.msra.mxu0 %v2199_v36  ;;  %1573 = vmatprep.mubr.msk.f32.mxu0 %vm1637_vm1, %v1636_v3 }
 0x130   :  { %1567 = vmatprep.subr.mxu0 %v1636_v3 }
 0x131   :  { %1568 = vmatpush3.msra.mxu0 %v2200_v38 }
 0x132   :  { %1569 = vmatprep.subr.mxu0 %v1636_v3 }
 0x133   :  { %1570 = vmatpush3.msra.mxu0 %v2201_v39 }
 0x134   :  { %1571 = vmatprep.subr.mxu0 %v1636_v3 }
 0x135   :  { %1572 = vmatpush3.msra.mxu0 %v2202_v40 }
 0x136   :  { %1574 = vmatmul.mubr.f32.vlgmr.msra.gmra.mxu0 %v2019_v61 }
 0x1ac   :  { %v783_v41 = vpop.f32.mrf.mxu1 }
 0x1ae   :  { %v1470_v42 = vpop.f32.mrf.mxu1 }
 0x1b4   :  { %v632_v43 = vpop.f32.mrf.mxu0 }
 0x1b5   :  { %v633_v60 = vadd.f32 %v1202_v59, %v632_v43 }
 0x1b6   :  { %v1435_v44 = vpop.f32.mrf.mxu0 }
 0x1b7   :  { %v784_v3 = vadd.f32 %v783_v41, %v633_v60 }
 0x1cc   :  { %v976_v45 = vpop.f32.mrf.mxu1 }
 0x1ce   :  { %v1540_v47 = vpop.f32.mrf.mxu1 }
 0x1d5   :  { %v887_v49 = vpop.f32.mrf.mxu0 }
 0x1d6   :  { %v888_v0 = vadd.f32 %v887_v49, %v784_v3 }
 0x1d7   :  { %v1505_v57 = vpop.f32.mrf.mxu0 }
 0x1d8   :  { %v977_v4 = vadd.f32 %v976_v45, %v888_v0 }
 0x1ee   :  { %v1182_v62 = vpop.f32.mrf.mxu1 }
 0x1f0   :  { %v1610_v63 = vpop.f32.mrf.mxu1 }
 0x1f6   :  { %v1095_v5 = vpop.f32.mrf.mxu0 }
 0x1f7   :  { %v1096_v6 = vadd.f32 %v1095_v5, %v977_v4 }
 0x1f8   :  { %v1575_v10 = vpop.f32.mrf.mxu0 }
 0x1f9   :  { %v1183_v11 = vadd.f32 %v1182_v62, %v1096_v6 }
 0x1fb   :  { %1186 = vst.msk [vmem:[#allocation2] sm:$0xff] %vm33_vm0, %v1183_v11 }
 0x1fc   :  { %1625 = shalt.err (!%p1622_p4)
}
 0x1fd   :  { %1196 = dma.vmem_to_hbm [thread:$0]  %s1194_s9, 128, %s2192_s5, [#allocation3]  }
 0x1fe   :  { %1634 = dma.done.wait [#allocation3], 128  }
 0x1ff   :  { %1635 = vsyncadd [#allocation3], 4294967168 }
 0x200   :  { %1200 = vsyncpa [#allocation3], 1 }

// kernel: tpu_custom_call.1
= control target key start
LH: loop header
LB: loop body
LE: loop exit
PB: predicated region body
PF: predicated region fallthrough
CT: control target
= control target key end

     0   :  { %vm33_vm0 = vcmask 261120   ;;  %v1636_v3 = vmov 0.0   ;;  %vm1637_vm1 = vmmov 0   ;;  %s2187_s0 = inlined_call_operand.vmem [shape: f32[8,32], index: 0, kind: input, shape index: {}]   ;;  %s2188_s1 = inlined_call_operand.vmem [shape: f32[32,128], index: 1, kind: input, shape index: {}]   ;;  %s2189_s2 = inlined_call_operand.vmem [shape: f32[1,128], index: 2, kind: input, shape index: {}]   ;;  %s2190_s3 = inlined_call_operand.vmem [shape: f32[128,32], index: 3, kind: input, shape index: {}]   ;;  %s2191_s4 = inlined_call_operand.vmem [shape: f32[1,32], index: 4, kind: input, shape index: {}]   ;;  %s2192_s5 = inlined_call_operand.hbm [shape: f32[8,32], index: 5, kind: output, shape index: {}]  }
   0x1   :  { %v25_v0 = vld [vmem:[%s2188_s1 + $0x18] sm:$0xff]  ;;  %v24_v1 = vld [vmem:[%s2188_s1 + $0x10] sm:$0xff]  ;;  %v23_v2 = vld [vmem:[%s2188_s1 + $0x8] sm:$0xff]  ;;  %1335 = vmatprep.subr.mxu0 %v1636_v3  ;;  %1346 = vmatprep.subr.mxu1 %v1636_v3 }
   0x2   :  { %v1679_v4 = vand.u32 4294901760, %v25_v0  ;;  %v1681_v5 = vand.u32 4294901760, %v24_v1  ;;  %v1683_v6 = vand.u32 4294901760, %v23_v2  ;;  %v22_v7 = vld [vmem:[%s2188_s1] sm:$0xff]  ;;  %1343 = vmatprep.mubr.msk.f32.mxu0 %vm1637_vm1, %v1636_v3  ;;  %1354 = vmatprep.mubr.msk.f32.mxu1 %vm1637_vm1, %v1636_v3 }
   0x3   :  { %v21_v8 = vld [vmem:[%s2187_s0] sm:$0xff]  ;;  %v1692_v9 = vand.u32 4294901760, %v22_v7 }
   0x4   :  { %v35_v10 = vsel %vm33_vm0, %v21_v8, 0  ;;  %1336 = vmatpush3.msra.mxu0 %v1679_v4  ;;  %v142_v11 = vsub.f32 %v25_v0, %v1679_v4  ;;  %v149_v13 = vsub.f32 %v24_v1, %v1681_v5  ;;  %v1705_v14 = vsub.f32 %v23_v2, %v1683_v6 }
   0x5   :  { %v1701_v12 = vand.u32 4294901760, %v35_v10 }
   0x6   :  { %10 = vsyncpa [#allocation3], 0  ;;  %1337 = vmatprep.subr.mxu0 %v1636_v3  ;;  %v1709_v15 = vsub.f32 %v22_v7, %v1692_v9  ;;  %v143_v16 = vand.u32 4294901760, %v142_v11  ;;  %v150_v18 = vand.u32 4294901760, %v149_v13  ;;  %v157_v19 = vand.u32 4294901760, %v1705_v14  ;;  %v537_v32 = vld [vmem:[%s2190_s3 + $0x78] sm:$0xff] }
   0x7   :  { %1338 = vmatpush3.msra.mxu0 %v1681_v5  ;;  %v1713_v17 = vsub.f32 %v35_v10, %v1701_v12  ;;  %v536_v33 = vld [vmem:[%s2190_s3 + $0x70] sm:$0xff]  ;;  %v1743_v34 = vand.u32 4294901760, %v537_v32  ;;  %v535_v35 = vld [vmem:[%s2190_s3 + $0x68] sm:$0xff]  ;;  %v534_v37 = vld [vmem:[%s2190_s3 + $0x60] sm:$0xff]  ;;  %s1638_s8 = smov [#allocation2]  }
   0x8   :  { %1339 = vmatprep.subr.mxu0 %v1636_v3  ;;  %v164_v20 = vand.u32 4294901760, %v1709_v15  ;;  %v144_v21 = vsub.f32 %v142_v11, %v143_v16  ;;  %v151_v23 = vsub.f32 %v149_v13, %v150_v18  ;;  %v158_v24 = vsub.f32 %v1705_v14, %v157_v19  ;;  %v533_v56 = vld [vmem:[%s2190_s3 + $0x58] sm:$0xff]  ;;  %v532_v58 = vld [vmem:[%s2190_s3 + $0x50] sm:$0xff]  ;;  %v531_v61 = vld [vmem:[%s2190_s3 + $0x48] sm:$0xff]  ;;  %s1193_s9 = sshll.u32 %s1638_s8, 4  ;;  %s1194_s9 = int_to_ptr.vmem [resolvable:$true] %s1193_s9 }
   0x9   :  { %1340 = vmatpush3.msra.mxu0 %v1683_v6  ;;  %v108_v22 = vand.u32 4294901760, %v1713_v17  ;;  %v1753_v36 = vand.u32 4294901760, %v536_v33  ;;  %v1762_v38 = vsub.f32 %v537_v32, %v1743_v34  ;;  %v1764_v39 = vand.u32 4294901760, %v535_v35  ;;  %v530_v1 = vld [vmem:[%s2190_s3 + $0x40] sm:$0xff]  ;;  %v529_v7 = vld [vmem:[%s2190_s3 + $0x38] sm:$0xff]  ;;  %s1614_s10 = scalar_lea.vmem %s1194_s9, 128  ;;  %p1619_p1 = scmp.lt.s32.totalorder %s1194_s9, %s1194_s9 }
   0xa   :  { %1341 = vmatprep.subr.mxu0 %v1636_v3  ;;  %v145_v25 = vand.u32 4294901760, %v144_v21  ;;  %v152_v27 = vand.u32 4294901760, %v151_v23  ;;  %v165_v28 = vsub.f32 %v1709_v15, %v164_v20  ;;  %v159_v30 = vand.u32 4294901760, %v158_v24  ;;  %p1615_p0 = scmp.ne.s32.totalorder %s1194_s9, %s1614_s10  ;;  %p1620_p2 = scmp.lt.s32.totalorder %s1614_s10, %s1614_s10 }
   0xb   :  { %1342 = vmatpush3.msra.mxu0 %v1692_v9  ;;  %v109_v26 = vsub.f32 %v1713_v17, %v108_v22  ;;  %v1770_v40 = vsub.f32 %v536_v33, %v1753_v36  ;;  %v1772_v41 = vand.u32 4294901760, %v534_v37  ;;  %v639_v42 = vand.u32 4294901760, %v1762_v38 }
   0xc   :  { %1357 = vmatprep.subr.mxu0 %v1636_v3  ;;  %1347 = vmatpush3.msra.mxu1 %v145_v25  ;;  %v166_v31 = vand.u32 4294901760, %v165_v28  ;;  %v1781_v43 = vsub.f32 %v535_v35, %v1764_v39  ;;  %v1839_v57 = vand.u32 4294901760, %v533_v56  ;;  %v1847_v60 = vand.u32 4294901760, %v532_v58  ;;  %v526_v25 = vld [vmem:[%s2190_s3 + $0x20] sm:$0xff]  ;;  %p1621_p3 = por %p1620_p2, %p1619_p1 }
   0xd   :  { %v110_v29 = vand.u32 4294901760, %v109_v26  ;;  %1348 = vmatprep.subr.mxu1 %v1636_v3  ;;  %v646_v44 = vand.u32 4294901760, %v1770_v40  ;;  %v1787_v45 = vsub.f32 %v534_v37, %v1772_v41  ;;  %v640_v46 = vsub.f32 %v1762_v38, %v639_v42 }
   0xe   :  { %1349 = vmatpush3.msra.mxu1 %v152_v27  ;;  %v653_v47 = vand.u32 4294901760, %v1781_v43  ;;  %v1845_v59 = vsub.f32 %v533_v56, %v1839_v57  ;;  %v1856_v63 = vsub.f32 %v532_v58, %v1847_v60  ;;  %v1858_v0 = vand.u32 4294901760, %v531_v61  ;;  %p1622_p4 = pnand %p1621_p3, %p1615_p0 }
   0xf   :  { %1344 = vmatmul.mubr.f32.vlgmr.msra.gmra.mxu0 %v110_v29  ;;  %1350 = vmatprep.subr.mxu1 %v1636_v3  ;;  %v647_v48 = vsub.f32 %v1770_v40, %v646_v44  ;;  %v660_v49 = vand.u32 4294901760, %v1787_v45  ;;  %v641_v50 = vand.u32 4294901760, %v640_v46  ;;  %v1926_v29 = vand.u32 4294901760, %v526_v25 }
  0x10   :  { %1358 = vmatpush3.msra.mxu0 %v142_v11  ;;  %1351 = vmatpush3.msra.mxu1 %v159_v30  ;;  %v654_v51 = vsub.f32 %v1781_v43, %v653_v47  ;;  %v667_v62 = vand.u32 4294901760, %v1845_v59 }
  0x11   :  { %1359 = vmatprep.subr.mxu0 %v1636_v3  ;;  %1352 = vmatprep.subr.mxu1 %v1636_v3  ;;  %v648_v52 = vand.u32 4294901760, %v647_v48  ;;  %v661_v53 = vsub.f32 %v1787_v45, %v660_v49  ;;  %v1942_v35 = vsub.f32 %v526_v25, %v1926_v29  ;;  %v524_v48 = vld [vmem:[%s2190_s3 + $0x10] sm:$0xff] }
  0x12   :  { %1360 = vmatpush3.msra.mxu0 %v149_v13  ;;  %1353 = vmatpush3.msra.mxu1 %v166_v31  ;;  %v655_v54 = vand.u32 4294901760, %v654_v51  ;;  %v668_v2 = vsub.f32 %v1845_v59, %v667_v62  ;;  %v528_v13 = vld [vmem:[%s2190_s3 + $0x30] sm:$0xff]  ;;  %v525_v31 = vld [vmem:[%s2190_s3 + $0x18] sm:$0xff] }
  0x13   :  { %1361 = vmatprep.subr.mxu0 %v1636_v3  ;;  %1355 = vmatmul.mubr.f32.vlgmr.msra.gmra.mxu1 %v1701_v12  ;;  %v662_v55 = vand.u32 4294901760, %v661_v53  ;;  %v1944_v37 = vand.u32 4294901760, %v525_v31 }
  0x14   :  { %1362 = vmatpush3.msra.mxu0 %v1705_v14  ;;  %1368 = vmatprep.subr.mxu1 %v1636_v3  ;;  %v669_v8 = vand.u32 4294901760, %v668_v2 }
  0x15   :  { %1363 = vmatprep.subr.mxu0 %v1636_v3  ;;  %1369 = vmatpush3.msra.mxu1 %v1679_v4  ;;  %v1957_v53 = vsub.f32 %v525_v31, %v1944_v37 }
  0x16   :  { %1364 = vmatpush3.msra.mxu0 %v1709_v15  ;;  %1365 = vmatprep.mubr.msk.f32.mxu0 %vm1637_vm1, %v1636_v3 }
  0x17   :  { %1370 = vmatprep.subr.mxu1 %v1636_v3  ;;  %1379 = vmatprep.subr.mxu0 %v1636_v3 }
  0x18   :  { %1366 = vmatmul.mubr.f32.vlgmr.msra.gmra.mxu0 %v1713_v17  ;;  %1371 = vmatpush3.msra.mxu1 %v1681_v5  ;;  %v1897_v17 = vand.u32 4294901760, %v528_v13 }
  0x19   :  { %1380 = vmatpush3.msra.mxu0 %v143_v16  ;;  %1372 = vmatprep.subr.mxu1 %v1636_v3 }
  0x1a   :  { %1381 = vmatprep.subr.mxu0 %v1636_v3  ;;  %1373 = vmatpush3.msra.mxu1 %v1683_v6 }
  0x1b   :  { %1382 = vmatpush3.msra.mxu0 %v150_v18  ;;  %1374 = vmatprep.subr.mxu1 %v1636_v3 }
  0x1c   :  { %1383 = vmatprep.subr.mxu0 %v1636_v3  ;;  %1375 = vmatpush3.msra.mxu1 %v1692_v9 }
  0x1d   :  { %1376 = vmatprep.mubr.msk.f32.mxu1 %vm1637_vm1, %v1636_v3  ;;  %1384 = vmatpush3.msra.mxu0 %v157_v19  ;;  %v527_v19 = vld [vmem:[%s2190_s3 + $0x28] sm:$0xff] }
  0x1e   :  { %1377 = vmatmul.mubr.f32.vlgmr.msra.gmra.mxu1 %v108_v22  ;;  %1385 = vmatprep.subr.mxu0 %v1636_v3  ;;  %v1911_v22 = vsub.f32 %v528_v13, %v1897_v17  ;;  %v1913_v23 = vand.u32 4294901760, %v527_v19 }
  0x1f   :  { %1390 = vmatprep.subr.mxu1 %v1636_v3  ;;  %1386 = vmatpush3.msra.mxu0 %v164_v20 }
  0x20   :  { %1387 = vmatprep.mubr.msk.f32.mxu0 %vm1637_vm1, %v1636_v3  ;;  %1391 = vmatpush3.msra.mxu1 %v1679_v4  ;;  %v674_v4 = vand.u32 4294901760, %v1856_v63  ;;  %v702_v27 = vand.u32 4294901760, %v1911_v22  ;;  %v1924_v28 = vsub.f32 %v527_v19, %v1913_v23 }
  0x21   :  { %1388 = vmatmul.mubr.f32.vlgmr.msra.gmra.mxu0 %v1701_v12  ;;  %1392 = vmatprep.subr.mxu1 %v1636_v3 }
  0x22   :  { %1398 = vmatprep.mubr.msk.f32.mxu1 %vm1637_vm1, %v1636_v3  ;;  %1393 = vmatpush3.msra.mxu1 %v1681_v5  ;;  %v1870_v5 = vsub.f32 %v531_v61, %v1858_v0  ;;  %v703_v32 = vsub.f32 %v1911_v22, %v702_v27  ;;  %v709_v33 = vand.u32 4294901760, %v1924_v28  ;;  %v2196_v61 = vand.u32 4294901760, %v1957_v53 }
  0x23   :  { %1401 = vmatprep.subr.mxu0 %v1636_v3  ;;  %1394 = vmatprep.subr.mxu1 %v1636_v3 }
  0x24   :  { %1402 = vmatpush3.msra.mxu0 %v1743_v34  ;;  %1395 = vmatpush3.msra.mxu1 %v1683_v6  ;;  %v1872_v6 = vand.u32 4294901760, %v530_v1  ;;  %v681_v10 = vand.u32 4294901760, %v1870_v5  ;;  %v710_v51 = vsub.f32 %v1924_v28, %v709_v33 }
  0x25   :  { %1403 = vmatprep.subr.mxu0 %v1636_v3  ;;  %1396 = vmatprep.subr.mxu1 %v1636_v3 }
  0x26   :  { %1404 = vmatpush3.msra.mxu0 %v1753_v36  ;;  %1397 = vmatpush3.msra.mxu1 %v1692_v9  ;;  %v675_v9 = vsub.f32 %v1856_v63, %v674_v4  ;;  %v1884_v11 = vsub.f32 %v530_v1, %v1872_v6  ;;  %v682_v15 = vsub.f32 %v1870_v5, %v681_v10  ;;  %v711_v56 = vand.u32 4294901760, %v710_v51 }
  0x27   :  { %1405 = vmatprep.subr.mxu0 %v1636_v3  ;;  %1399 = vmatmul.mubr.f32.vlgmr.msra.gmra.mxu1 %v1701_v12  ;;  %v1887_v12 = vand.u32 4294901760, %v529_v7 }
  0x28   :  { %1436 = vmatprep.subr.mxu1 %v1636_v3  ;;  %1406 = vmatpush3.msra.mxu0 %v1764_v39  ;;  %v676_v14 = vand.u32 4294901760, %v675_v9  ;;  %v688_v16 = vand.u32 4294901760, %v1884_v11  ;;  %v683_v20 = vand.u32 4294901760, %v682_v15  ;;  %v724_v9 = vsub.f32 %v1957_v53, %v2196_v61 }
  0x29   :  { %1437 = vmatpush3.msra.mxu1 %v641_v50  ;;  %1407 = vmatprep.subr.mxu0 %v1636_v3  ;;  %v1901_v18 = vsub.f32 %v529_v7, %v1887_v12  ;;  %v704_v50 = vand.u32 4294901760, %v703_v32  ;;  %v522_v7 = vld [vmem:[%s2190_s3] sm:$0xff] }
  0x2a   :  { %1438 = vmatprep.subr.mxu1 %v1636_v3  ;;  %1408 = vmatpush3.msra.mxu0 %v1772_v41  ;;  %v689_v21 = vsub.f32 %v1884_v11, %v688_v16  ;;  %v725_v19 = vand.u32 4294901760, %v724_v9 }
  0x2b   :  { %1439 = vmatpush3.msra.mxu1 %v648_v52  ;;  %1409 = vmatprep.subr.mxu0 %v1636_v3  ;;  %v695_v24 = vand.u32 4294901760, %v1901_v18  ;;  %v2197_v52 = vand.u32 4294901760, %v1942_v35 }
  0x2c   :  { %1440 = vmatprep.subr.mxu1 %v1636_v3  ;;  %1468 = vmatprep.mubr.msk.f32.mxu1 %vm1637_vm1, %v1636_v3  ;;  %v690_v26 = vand.u32 4294901760, %v689_v21 }
  0x2d   :  { %1441 = vmatpush3.msra.mxu1 %v655_v54  ;;  %1433 = vmatprep.mubr.msk.f32.mxu0 %vm1637_vm1, %v1636_v3  ;;  %v696_v30 = vsub.f32 %v1901_v18, %v695_v24  ;;  %v1960_v54 = vand.u32 4294901760, %v524_v48  ;;  %v717_v58 = vsub.f32 %v1942_v35, %v2197_v52 }
  0x2e   :  { %1442 = vmatprep.subr.mxu1 %v1636_v3  ;;  %1410 = vmatpush3.msra.mxu0 %v1839_v57 }
  0x2f   :  { %1443 = vmatpush3.msra.mxu1 %v662_v55  ;;  %1411 = vmatprep.subr.mxu0 %v1636_v3  ;;  %v697_v46 = vand.u32 4294901760, %v696_v30  ;;  %v523_v55 = vld [vmem:[%s2190_s3 + $0x8] sm:$0xff]  ;;  %v1975_v2 = vsub.f32 %v524_v48, %v1960_v54 }
  0x30   :  { %1444 = vmatprep.subr.mxu1 %v1636_v3  ;;  %1412 = vmatpush3.msra.mxu0 %v1847_v60  ;;  %v1971_v1 = vand.u32 4294901760, %v523_v55 }
  0x31   :  { %1413 = vmatprep.subr.mxu0 %v1636_v3  ;;  %1445 = vmatpush3.msra.mxu1 %v669_v8  ;;  %v718_v8 = vand.u32 4294901760, %v717_v58  ;;  %v2195_v15 = vand.u32 4294901760, %v1975_v2 }
  0x32   :  { %1414 = vmatpush3.msra.mxu0 %v1858_v0  ;;  %1446 = vmatprep.subr.mxu1 %v1636_v3  ;;  %v1986_v13 = vsub.f32 %v523_v55, %v1971_v1 }
  0x33   :  { %1415 = vmatprep.subr.mxu0 %v1636_v3  ;;  %1447 = vmatpush3.msra.mxu1 %v676_v14  ;;  %v1988_v14 = vand.u32 4294901760, %v522_v7  ;;  %v731_v25 = vsub.f32 %v1975_v2, %v2195_v15 }
  0x34   :  { %1416 = vmatpush3.msra.mxu0 %v1872_v6  ;;  %1448 = vmatprep.subr.mxu1 %v1636_v3 }
  0x35   :  { %1417 = vmatprep.subr.mxu0 %v1636_v3  ;;  %1449 = vmatpush3.msra.mxu1 %v683_v20  ;;  %v2194_v20 = vand.u32 4294901760, %v1986_v13  ;;  %v1996_v21 = vsub.f32 %v522_v7, %v1988_v14  ;;  %v732_v31 = vand.u32 4294901760, %v731_v25 }
  0x36   :  { %1418 = vmatpush3.msra.mxu0 %v1887_v12  ;;  %1450 = vmatprep.subr.mxu1 %v1636_v3 }
  0x37   :  { %1419 = vmatprep.subr.mxu0 %v1636_v3  ;;  %1451 = vmatpush3.msra.mxu1 %v690_v26  ;;  %v738_v26 = vsub.f32 %v1986_v13, %v2194_v20  ;;  %v2193_v30 = vand.u32 4294901760, %v1996_v21 }
  0x38   :  { %1420 = vmatpush3.msra.mxu0 %v1897_v17  ;;  %1452 = vmatprep.subr.mxu1 %v1636_v3 }
  0x39   :  { %1421 = vmatprep.subr.mxu0 %v1636_v3  ;;  %1453 = vmatpush3.msra.mxu1 %v697_v46  ;;  %v739_v32 = vand.u32 4294901760, %v738_v26  ;;  %v745_v46 = vsub.f32 %v1996_v21, %v2193_v30 }
  0x3a   :  { %1422 = vmatpush3.msra.mxu0 %v1913_v23  ;;  %1454 = vmatprep.subr.mxu1 %v1636_v3 }
  0x3b   :  { %1423 = vmatprep.subr.mxu0 %v1636_v3  ;;  %1455 = vmatpush3.msra.mxu1 %v704_v50  ;;  %v746_v48 = vand.u32 4294901760, %v745_v46 }
  0x3c   :  { %1424 = vmatpush3.msra.mxu0 %v1926_v29  ;;  %1456 = vmatprep.subr.mxu1 %v1636_v3 }
  0x3d   :  { %1425 = vmatprep.subr.mxu0 %v1636_v3  ;;  %1457 = vmatpush3.msra.mxu1 %v711_v56  ;;  %v1201_v56 = vld [vmem:[%s2189_s2] ss:$0 sm:$0xff] }
  0x3e   :  { %1426 = vmatpush3.msra.mxu0 %v1944_v37  ;;  %1458 = vmatprep.subr.mxu1 %v1636_v3 }
  0x3f   :  { %1427 = vmatprep.subr.mxu0 %v1636_v3  ;;  %1459 = vmatpush3.msra.mxu1 %v718_v8 }
  0x40   :  { %1428 = vmatpush3.msra.mxu0 %v1960_v54  ;;  %1460 = vmatprep.subr.mxu1 %v1636_v3 }
  0x41   :  { %1429 = vmatprep.subr.mxu0 %v1636_v3  ;;  %1461 = vmatpush3.msra.mxu1 %v725_v19 }
  0x42   :  { %1430 = vmatpush3.msra.mxu0 %v1971_v1  ;;  %1462 = vmatprep.subr.mxu1 %v1636_v3 }
  0x43   :  { %1431 = vmatprep.subr.mxu0 %v1636_v3  ;;  %1463 = vmatpush3.msra.mxu1 %v732_v31 }
  0x44   :  { %1432 = vmatpush3.msra.mxu0 %v1988_v14  ;;  %1464 = vmatprep.subr.mxu1 %v1636_v3 }
  0x45   :  { %1471 = vmatprep.subr.mxu0 %v1636_v3  ;;  %1465 = vmatpush3.msra.mxu1 %v739_v32 }
  0x46   :  { %1466 = vmatprep.subr.mxu1 %v1636_v3 }
  0x47   :  { %1467 = vmatpush3.msra.mxu1 %v746_v48 }
  0x48   :  { %1506 = vmatprep.subr.mxu1 %v1636_v3 }
  0xcf   :  { %v112_v50 = vpop.f32.mrf.mxu0 }
  0xd0   :  { %v113_v8 = vadd.f32 %v1201_v56, %v112_v50 }
  0xd1   :  { %v1345_v51 = vpop.f32.mrf.mxu0 }
  0xd3   :  { %v203_v55 = vpop.f32.mrf.mxu1 }
  0xd4   :  { %v204_v19 = vadd.f32 %v203_v55, %v113_v8 }
  0xd5   :  { %v1356_v58 = vpop.f32.mrf.mxu1 }
  0xd8   :  { %v283_v7 = vpop.f32.mrf.mxu0 }
  0xd9   :  { %v284_v31 = vadd.f32 %v283_v7, %v204_v19 }
  0xda   :  { %v1367_v9 = vpop.f32.mrf.mxu0 }
  0xde   :  { %v360_v25 = vpop.f32.mrf.mxu1 }
  0xdf   :  { %v361_v46 = vadd.f32 %v360_v25, %v284_v31 }
  0xe0   :  { %v1378_v26 = vpop.f32.mrf.mxu1 }
  0xe1   :  { %v443_v32 = vpop.f32.mrf.mxu0 }
  0xe2   :  { %v444_v30 = vadd.f32 %v443_v32, %v361_v46 }
  0xe3   :  { %v1389_v48 = vpop.f32.mrf.mxu0 }
  0xe7   :  { %v518_v20 = vpop.f32.mrf.mxu1 }
  0xe8   :  { %v519_v15 = vadd.f32 %v518_v20, %v444_v30 }
  0xe9   :  { %v1400_v51 = vpop.f32.mrf.mxu1 }
  0xea   :  { %v2019_v61 = vand.u32 4294901760, %v519_v15 }
  0xec   :  { %v2022_v52 = vsub.f32 %v519_v15, %v2019_v61  ;;  %1469 = vmatmul.mubr.f32.vlgmr.msra.gmra.mxu1 %v2019_v61 }
  0xed   :  { %1507 = vmatpush3.msra.mxu1 %v1743_v34  ;;  %1538 = vmatprep.mubr.msk.f32.mxu1 %vm1637_vm1, %v1636_v3 }
  0xee   :  { %v628_v50 = vand.u32 4294901760, %v2022_v52  ;;  %1508 = vmatprep.subr.mxu1 %v1636_v3 }
  0xef   :  { %1509 = vmatpush3.msra.mxu1 %v1753_v36 }
  0xf0   :  { %v629_v20 = vsub.f32 %v2022_v52, %v628_v50  ;;  %1510 = vmatprep.subr.mxu1 %v1636_v3 }
  0xf1   :  { %1511 = vmatpush3.msra.mxu1 %v1764_v39 }
  0xf2   :  { %1512 = vmatprep.subr.mxu1 %v1636_v3  ;;  %v630_v15 = vand.u32 4294901760, %v629_v20 }
  0xf3   :  { %1513 = vmatpush3.msra.mxu1 %v1772_v41 }
  0xf4   :  { %1514 = vmatprep.subr.mxu1 %v1636_v3  ;;  %1434 = vmatmul.mubr.f32.vlgmr.msra.gmra.mxu0 %v630_v15 }
  0xf5   :  { %1472 = vmatpush3.msra.mxu0 %v1762_v38  ;;  %1515 = vmatpush3.msra.mxu1 %v1839_v57  ;;  %v2200_v38 = vand.u32 4294901760, %v1975_v2 }
  0xf6   :  { %1473 = vmatprep.subr.mxu0 %v1636_v3  ;;  %1516 = vmatprep.subr.mxu1 %v1636_v3 }
  0xf7   :  { %1474 = vmatpush3.msra.mxu0 %v1770_v40  ;;  %1517 = vmatpush3.msra.mxu1 %v1847_v60  ;;  %v2202_v40 = vand.u32 4294901760, %v1996_v21 }
  0xf8   :  { %1475 = vmatprep.subr.mxu0 %v1636_v3  ;;  %1518 = vmatprep.subr.mxu1 %v1636_v3 }
  0xf9   :  { %1476 = vmatpush3.msra.mxu0 %v1781_v43  ;;  %1519 = vmatpush3.msra.mxu1 %v1858_v0 }
  0xfa   :  { %1477 = vmatprep.subr.mxu0 %v1636_v3  ;;  %1520 = vmatprep.subr.mxu1 %v1636_v3 }
  0xfb   :  { %1478 = vmatpush3.msra.mxu0 %v1787_v45  ;;  %1521 = vmatpush3.msra.mxu1 %v1872_v6 }
  0xfc   :  { %1479 = vmatprep.subr.mxu0 %v1636_v3  ;;  %1522 = vmatprep.subr.mxu1 %v1636_v3 }
  0xfd   :  { %1480 = vmatpush3.msra.mxu0 %v1845_v59  ;;  %1523 = vmatpush3.msra.mxu1 %v1887_v12  ;;  %v1202_v59 = vld [vmem:[%s2191_s4] ss:$0 sm:$0xff] }
  0xfe   :  { %1481 = vmatprep.subr.mxu0 %v1636_v3  ;;  %1524 = vmatprep.subr.mxu1 %v1636_v3 }
  0xff   :  { %1482 = vmatpush3.msra.mxu0 %v1856_v63  ;;  %1525 = vmatpush3.msra.mxu1 %v1897_v17 }
 0x100   :  { %1483 = vmatprep.subr.mxu0 %v1636_v3  ;;  %1526 = vmatprep.subr.mxu1 %v1636_v3 }
 0x101   :  { %1484 = vmatpush3.msra.mxu0 %v1870_v5  ;;  %1527 = vmatpush3.msra.mxu1 %v1913_v23 }
 0x102   :  { %1485 = vmatprep.subr.mxu0 %v1636_v3  ;;  %1528 = vmatprep.subr.mxu1 %v1636_v3 }
 0x103   :  { %1486 = vmatpush3.msra.mxu0 %v1884_v11  ;;  %1529 = vmatpush3.msra.mxu1 %v1926_v29 }
 0x104   :  { %1487 = vmatprep.subr.mxu0 %v1636_v3  ;;  %1530 = vmatprep.subr.mxu1 %v1636_v3 }
 0x105   :  { %1488 = vmatpush3.msra.mxu0 %v1901_v18  ;;  %1531 = vmatpush3.msra.mxu1 %v1944_v37 }
 0x106   :  { %1489 = vmatprep.subr.mxu0 %v1636_v3  ;;  %1532 = vmatprep.subr.mxu1 %v1636_v3 }
 0x107   :  { %1490 = vmatpush3.msra.mxu0 %v1911_v22  ;;  %1533 = vmatpush3.msra.mxu1 %v1960_v54 }
 0x108   :  { %1491 = vmatprep.subr.mxu0 %v1636_v3  ;;  %1534 = vmatprep.subr.mxu1 %v1636_v3 }
 0x109   :  { %1492 = vmatpush3.msra.mxu0 %v1924_v28  ;;  %1535 = vmatpush3.msra.mxu1 %v1971_v1 }
 0x10a   :  { %1493 = vmatprep.subr.mxu0 %v1636_v3  ;;  %1536 = vmatprep.subr.mxu1 %v1636_v3 }
 0x10b   :  { %1494 = vmatpush3.msra.mxu0 %v1942_v35  ;;  %1537 = vmatpush3.msra.mxu1 %v1988_v14 }
 0x10c   :  { %1495 = vmatprep.subr.mxu0 %v1636_v3  ;;  %1539 = vmatmul.mubr.f32.vlgmr.msra.gmra.mxu1 %v628_v50 }
 0x10d   :  { %1576 = vmatprep.subr.mxu1 %v1636_v3  ;;  %1496 = vmatpush3.msra.mxu0 %v1957_v53 }
 0x10e   :  { %1577 = vmatpush3.msra.mxu1 %v1743_v34  ;;  %1497 = vmatprep.subr.mxu0 %v1636_v3  ;;  %v2198_v34 = vand.u32 4294901760, %v1942_v35 }
 0x10f   :  { %1578 = vmatprep.subr.mxu1 %v1636_v3  ;;  %1498 = vmatpush3.msra.mxu0 %v1975_v2 }
 0x110   :  { %1579 = vmatpush3.msra.mxu1 %v1753_v36  ;;  %1499 = vmatprep.subr.mxu0 %v1636_v3  ;;  %v2199_v36 = vand.u32 4294901760, %v1957_v53 }
 0x111   :  { %1580 = vmatprep.subr.mxu1 %v1636_v3  ;;  %1500 = vmatpush3.msra.mxu0 %v1986_v13 }
 0x112   :  { %1581 = vmatpush3.msra.mxu1 %v1764_v39  ;;  %1501 = vmatprep.subr.mxu0 %v1636_v3  ;;  %v2201_v39 = vand.u32 4294901760, %v1986_v13 }
 0x113   :  { %1582 = vmatprep.subr.mxu1 %v1636_v3  ;;  %1502 = vmatpush3.msra.mxu0 %v1996_v21 }
 0x114   :  { %1503 = vmatprep.mubr.msk.f32.mxu0 %vm1637_vm1, %v1636_v3  ;;  %1583 = vmatpush3.msra.mxu1 %v1772_v41 }
 0x115   :  { %1504 = vmatmul.mubr.f32.vlgmr.msra.gmra.mxu0 %v2022_v52  ;;  %1541 = vmatprep.subr.mxu0 %v1636_v3 }
 0x116   :  { %1584 = vmatprep.subr.mxu1 %v1636_v3  ;;  %1542 = vmatpush3.msra.mxu0 %v639_v42 }
 0x117   :  { %1585 = vmatpush3.msra.mxu1 %v1839_v57  ;;  %1543 = vmatprep.subr.mxu0 %v1636_v3 }
 0x118   :  { %1586 = vmatprep.subr.mxu1 %v1636_v3  ;;  %1544 = vmatpush3.msra.mxu0 %v646_v44 }
 0x119   :  { %1587 = vmatpush3.msra.mxu1 %v1847_v60  ;;  %1545 = vmatprep.subr.mxu0 %v1636_v3 }
 0x11a   :  { %1588 = vmatprep.subr.mxu1 %v1636_v3  ;;  %1546 = vmatpush3.msra.mxu0 %v653_v47 }
 0x11b   :  { %1589 = vmatpush3.msra.mxu1 %v1858_v0  ;;  %1547 = vmatprep.subr.mxu0 %v1636_v3 }
 0x11c   :  { %1590 = vmatprep.subr.mxu1 %v1636_v3  ;;  %1548 = vmatpush3.msra.mxu0 %v660_v49 }
 0x11d   :  { %1591 = vmatpush3.msra.mxu1 %v1872_v6  ;;  %1549 = vmatprep.subr.mxu0 %v1636_v3 }
 0x11e   :  { %1592 = vmatprep.subr.mxu1 %v1636_v3  ;;  %1550 = vmatpush3.msra.mxu0 %v667_v62 }
 0x11f   :  { %1593 = vmatpush3.msra.mxu1 %v1887_v12  ;;  %1551 = vmatprep.subr.mxu0 %v1636_v3 }
 0x120   :  { %1594 = vmatprep.subr.mxu1 %v1636_v3  ;;  %1552 = vmatpush3.msra.mxu0 %v674_v4 }
 0x121   :  { %1595 = vmatpush3.msra.mxu1 %v1897_v17  ;;  %1553 = vmatprep.subr.mxu0 %v1636_v3 }
 0x122   :  { %1596 = vmatprep.subr.mxu1 %v1636_v3  ;;  %1554 = vmatpush3.msra.mxu0 %v681_v10 }
 0x123   :  { %1597 = vmatpush3.msra.mxu1 %v1913_v23  ;;  %1555 = vmatprep.subr.mxu0 %v1636_v3 }
 0x124   :  { %1598 = vmatprep.subr.mxu1 %v1636_v3  ;;  %1556 = vmatpush3.msra.mxu0 %v688_v16 }
 0x125   :  { %1599 = vmatpush3.msra.mxu1 %v1926_v29  ;;  %1557 = vmatprep.subr.mxu0 %v1636_v3 }
 0x126   :  { %1600 = vmatprep.subr.mxu1 %v1636_v3  ;;  %1558 = vmatpush3.msra.mxu0 %v695_v24 }
 0x127   :  { %1601 = vmatpush3.msra.mxu1 %v1944_v37  ;;  %1559 = vmatprep.subr.mxu0 %v1636_v3 }
 0x128   :  { %1602 = vmatprep.subr.mxu1 %v1636_v3  ;;  %1560 = vmatpush3.msra.mxu0 %v702_v27 }
 0x129   :  { %1603 = vmatpush3.msra.mxu1 %v1960_v54  ;;  %1561 = vmatprep.subr.mxu0 %v1636_v3 }
 0x12a   :  { %1604 = vmatprep.subr.mxu1 %v1636_v3  ;;  %1562 = vmatpush3.msra.mxu0 %v709_v33 }
 0x12b   :  { %1605 = vmatpush3.msra.mxu1 %v1971_v1  ;;  %1563 = vmatprep.subr.mxu0 %v1636_v3 }
 0x12c   :  { %1606 = vmatprep.subr.mxu1 %v1636_v3  ;;  %1564 = vmatpush3.msra.mxu0 %v2198_v34 }
 0x12d   :  { %1607 = vmatpush3.msra.mxu1 %v1988_v14  ;;  %1608 = vmatprep.mubr.msk.f32.mxu1 %vm1637_vm1, %v1636_v3 }
 0x12e   :  { %1565 = vmatprep.subr.mxu0 %v1636_v3  ;;  %1609 = vmatmul.mubr.f32.vlgmr.msra.gmra.mxu1 %v2019_v61 }
 0x12f   :  { %1566 = vmatpush3.msra.mxu0 %v2199_v36  ;;  %1573 = vmatprep.mubr.msk.f32.mxu0 %vm1637_vm1, %v1636_v3 }
 0x130   :  { %1567 = vmatprep.subr.mxu0 %v1636_v3 }
 0x131   :  { %1568 = vmatpush3.msra.mxu0 %v2200_v38 }
 0x132   :  { %1569 = vmatprep.subr.mxu0 %v1636_v3 }
 0x133   :  { %1570 = vmatpush3.msra.mxu0 %v2201_v39 }
 0x134   :  { %1571 = vmatprep.subr.mxu0 %v1636_v3 }
 0x135   :  { %1572 = vmatpush3.msra.mxu0 %v2202_v40 }
 0x136   :  { %1574 = vmatmul.mubr.f32.vlgmr.msra.gmra.mxu0 %v2019_v61 }
 0x1ac   :  { %v783_v41 = vpop.f32.mrf.mxu1 }
 0x1ae   :  { %v1470_v42 = vpop.f32.mrf.mxu1 }
 0x1b4   :  { %v632_v43 = vpop.f32.mrf.mxu0 }
 0x1b5   :  { %v633_v60 = vadd.f32 %v1202_v59, %v632_v43 }
 0x1b6   :  { %v1435_v44 = vpop.f32.mrf.mxu0 }
 0x1b7   :  { %v784_v3 = vadd.f32 %v783_v41, %v633_v60 }
 0x1cc   :  { %v976_v45 = vpop.f32.mrf.mxu1 }
 0x1ce   :  { %v1540_v47 = vpop.f32.mrf.mxu1 }
 0x1d5   :  { %v887_v49 = vpop.f32.mrf.mxu0 }
 0x1d6   :  { %v888_v0 = vadd.f32 %v887_v49, %v784_v3 }
 0x1d7   :  { %v1505_v57 = vpop.f32.mrf.mxu0 }
 0x1d8   :  { %v977_v4 = vadd.f32 %v976_v45, %v888_v0 }
 0x1ee   :  { %v1182_v62 = vpop.f32.mrf.mxu1 }
 0x1f0   :  { %v1610_v63 = vpop.f32.mrf.mxu1 }
 0x1f6   :  { %v1095_v5 = vpop.f32.mrf.mxu0 }
 0x1f7   :  { %v1096_v6 = vadd.f32 %v1095_v5, %v977_v4 }
 0x1f8   :  { %v1575_v10 = vpop.f32.mrf.mxu0 }
 0x1f9   :  { %v1183_v11 = vadd.f32 %v1182_v62, %v1096_v6 }
 0x1fb   :  { %1186 = vst.msk [vmem:[#allocation2] sm:$0xff] %vm33_vm0, %v1183_v11 }
 0x1fc   :  { %1625 = shalt.err (!%p1622_p4)
}
 0x1fd   :  { %1196 = dma.vmem_to_hbm [thread:$0]  %s1194_s9, 128, %s2192_s5, [#allocation3]  }
 0x1fe   :  { %1634 = dma.done.wait [#allocation3], 128  }
 0x1ff   :  { %1635 = vsyncadd [#allocation3], 4294967168 }
 0x200   :  { %1200 = vsyncpa [#allocation3], 1 }

</bundles_post_ra>
